<compile_context>
chip_gen: v7x
topology: tpu7x:2x2x1
jax: 0.10.0
libtpu: 0.0.40
codegen_flags: <defaults>
</compile_context>

<pallas_src>
import jax
import jax.numpy as jnp
from jax.experimental import pallas as pl
from jax.experimental.pallas import tpu as pltpu


def _policy_kernel(x_ref, w1_ref, aux_ref, out_ref):
    """Fused two-head policy MLP.

    Shapes inside the kernel:
      x:   [TB, D]
      w1:  [D, 2H]    (fused [w1a | w1n])
      aux: [3, 2H]    (row 0 = fused b1, row 1 = signed w2 row, row 2 = b2 bcast)
      out: [TB, 1]
    """
    x = x_ref[...]                       # [TB, D]
    b1 = aux_ref[0:1, :]                 # [1, 2H]
    w2 = aux_ref[1:2, :]                 # [1, 2H]   (= [w2a ; -w2n]^T)
    b2 = aux_ref[2:3, 0:1]               # [1, 1]    (= b2a - b2n)

    # One MXU push covers both heads' first layers; one bias/ReLU pass (VPU).
    h = jnp.dot(x, w1_ref[...], preferred_element_type=jnp.float32) + b1
    h = jnp.maximum(h, 0.0)              # [TB, 2H]

    # Second layer + (a - na) fused: signed-weight dot product as a VPU
    # multiply + XLU lane reduction (no degenerate N=1 MXU matmul).
    z = jnp.sum(h * w2, axis=-1, keepdims=True) + b2      # [TB, 1]

    # sigmoid(z) = 1 / (1 + exp(-z)); exp + approx reciprocal both ride the EUP.
    out_ref[...] = pl.reciprocal(1.0 + jnp.exp(-z), approx=True)


def policy_forward(x, fused_params):
    """x: [B, D] float32 -> prob_action: [B] float32."""
    B, D = x.shape
    w1 = fused_params["w1"]              # [D, 2H]
    aux = fused_params["aux"]            # [3, 2H]
    two_h = w1.shape[1]

    # Full batch in one step when it fits; otherwise 1024-row tiles
    # (x tile = tb*D*4 bytes, h = tb*2H*4 bytes -> far below the VMEM limit
    # on v5e/v6e/v7x; bigger tiles amortize the ~0.35us per-grid-step cost).
    tb = B if B <= 1024 else 1024
    grid = (pl.cdiv(B, tb),)

    cost = pl.CostEstimate(
        flops=2 * B * D * two_h + 2 * B * two_h,
        transcendentals=2 * B,
        bytes_accessed=4 * (B * D + D * two_h + 3 * two_h + B),
    )

    out = pl.pallas_call(
        _policy_kernel,
        out_shape=jax.ShapeDtypeStruct((B, 1), jnp.float32),
        grid_spec=pltpu.PrefetchScalarGridSpec(
            num_scalar_prefetch=0,
            grid=grid,
            in_specs=[
                pl.BlockSpec((tb, D), lambda i: (i, 0)),       # x tiles stream
                pl.BlockSpec((D, two_h), lambda i: (0, 0)),    # weights resident
                pl.BlockSpec((3, two_h), lambda i: (0, 0)),    # packed b1/w2/b2
            ],
            out_specs=pl.BlockSpec((tb, 1), lambda i: (i, 0)),
        ),
        compiler_params=pltpu.CompilerParams(
            dimension_semantics=("parallel",),   # shard batch tiles across TCs
        ),
        cost_estimate=cost,
    )(x, w1, aux)
    return out[:, 0]  # matches torch .squeeze(-1)


def init_params(key, input_dim, hidden_dim=64):
    """Deterministic synthetic init (PyTorch-Linear-like uniform bounds)."""
    ks = jax.random.split(key, 8)

    def lin(kw, kb, fan_in, fan_out):
        bound = 1.0 / jnp.sqrt(fan_in)
        w = jax.random.uniform(kw, (fan_in, fan_out), jnp.float32, -bound, bound)
        b = jax.random.uniform(kb, (1, fan_out), jnp.float32, -bound, bound)
        return w, b

    w1a, b1a = lin(ks[0], ks[1], input_dim, hidden_dim)
    w2a, b2a = lin(ks[2], ks[3], hidden_dim, 1)
    w1n, b1n = lin(ks[4], ks[5], input_dim, hidden_dim)
    w2n, b2n = lin(ks[6], ks[7], hidden_dim, 1)
    return dict(w1a=w1a, b1a=b1a, w2a=w2a, b2a=b2a,
                w1n=w1n, b1n=b1n, w2n=w2n, b2n=b2n)


def fuse_params(p):
    """One-time (not per-call) packing of the 8 PyTorch-style tensors into
    the 2 arrays the kernel consumes."""
    w1 = jnp.concatenate([p["w1a"], p["w1n"]], axis=1)          # [D, 2H]
    b1 = jnp.concatenate([p["b1a"], p["b1n"]], axis=1)          # [1, 2H]
    w2 = jnp.concatenate([p["w2a"], -p["w2n"]], axis=0).T       # [1, 2H]
    b2 = (p["b2a"] - p["b2n"]).reshape(1, 1)                    # [1, 1]
    two_h = w1.shape[1]
    aux = jnp.concatenate(
        [b1, w2, jnp.broadcast_to(b2, (1, two_h))], axis=0)     # [3, 2H]
    return dict(w1=w1, aux=aux)


def policy_forward_ref(x, p):
    """Plain-JAX reference (un-fused, mirrors the PyTorch module exactly)."""
    ha = jnp.maximum(x @ p["w1a"] + p["b1a"], 0.0)
    a = (ha @ p["w2a"] + p["b2a"])[:, 0]
    hn = jnp.maximum(x @ p["w1n"] + p["b1n"], 0.0)
    na = (hn @ p["w2n"] + p["b2n"])[:, 0]
    return jax.nn.sigmoid(a - na)


if __name__ == "__main__":
    key = jax.random.PRNGKey(0)
    k_params, k_x = jax.random.split(key)

    B, D, H = 8, 32, 64
    raw = init_params(k_params, input_dim=D, hidden_dim=H)
    fused = fuse_params(raw)
    x = jax.random.normal(k_x, (B, D), dtype=jnp.float32)

    prob = policy_forward(x, fused)
    prob = jax.block_until_ready(prob)

    ref = policy_forward_ref(x, raw)
    assert prob.shape == (B,)
    # approx reciprocal in the sigmoid -> slightly looser tolerance than exact f32
    assert jnp.allclose(prob, ref, atol=2e-3, rtol=2e-3)

    print("KERNEL_OK")
</pallas_src>

<mosaic_0001>
module attributes {stable_mosaic.version = 11 : i64} {
  func.func @_policy_kernel(%arg0: i32, %arg1: memref<8x32xf32, #tpu.memory_space<vmem>>, %arg2: memref<32x128xf32, #tpu.memory_space<vmem>>, %arg3: memref<3x128xf32, #tpu.memory_space<vmem>>, %arg4: memref<8x1xf32, #tpu.memory_space<vmem>>) attributes {dimension_semantics = [#tpu.dimension_semantics<parallel>], iteration_bounds = array<i64: 1>, scalar_prefetch = 0 : i64, scratch_operands = 0 : i64, tpu.core_type = #tpu.core_type<tc>, window_params = [{transform_indices = @transform_0, window_bounds = array<i64: 8, 32>}, {pipeline_mode = #tpu.pipeline_mode<synchronous>, transform_indices = @transform_1, window_bounds = array<i64: 32, 128>}, {pipeline_mode = #tpu.pipeline_mode<synchronous>, transform_indices = @transform_2, window_bounds = array<i64: 3, 128>}, {transform_indices = @transform_3, window_bounds = array<i64: 8, 1>}]} {
    %c0 = arith.constant 0 : index
    %c0_0 = arith.constant 0 : index
    %0 = vector.load %arg1[%c0, %c0_0] : memref<8x32xf32, #tpu.memory_space<vmem>>, vector<8x32xf32>
    %c0_1 = arith.constant 0 : index
    %c0_2 = arith.constant 0 : index
    %1 = vector.load %arg3[%c0_1, %c0_2] : memref<3x128xf32, #tpu.memory_space<vmem>>, vector<1x128xf32>
    %c1 = arith.constant 1 : index
    %c0_3 = arith.constant 0 : index
    %2 = vector.load %arg3[%c1, %c0_3] : memref<3x128xf32, #tpu.memory_space<vmem>>, vector<1x128xf32>
    %c2 = arith.constant 2 : index
    %c0_4 = arith.constant 0 : index
    %3 = vector.load %arg3[%c2, %c0_4] : memref<3x128xf32, #tpu.memory_space<vmem>>, vector<1x1xf32>
    %c0_5 = arith.constant 0 : index
    %c0_6 = arith.constant 0 : index
    %4 = vector.load %arg2[%c0_5, %c0_6] : memref<32x128xf32, #tpu.memory_space<vmem>>, vector<32x128xf32>
    %cst = arith.constant dense<0.000000e+00> : vector<8x128xf32>
    %5 = tpu.matmul %0, %4, %cst {dimension_numbers = #tpu.dot_dimension_numbers<[1], [0], [0], [1], [0, 0, 1, 1], [], []>} : vector<8x32xf32>, vector<32x128xf32>, vector<8x128xf32> -> vector<8x128xf32>
    %6 = vector.broadcast %1 : vector<1x128xf32> to vector<8x128xf32>
    %7 = arith.addf %5, %6 : vector<8x128xf32>
    %cst_7 = arith.constant 0.000000e+00 : f32
    %8 = vector.broadcast %cst_7 : f32 to vector<8x128xf32>
    %9 = arith.maximumf %7, %8 : vector<8x128xf32>
    %10 = vector.broadcast %2 : vector<1x128xf32> to vector<8x128xf32>
    %11 = arith.mulf %9, %10 : vector<8x128xf32>
    %cst_8 = arith.constant dense<0.000000e+00> : vector<8xf32>
    %12 = vector.multi_reduction <add>, %11, %cst_8 [1] : vector<8x128xf32> to vector<8xf32>
    %13 = vector.shape_cast %12 : vector<8xf32> to vector<8x1xf32>
    %14 = vector.broadcast %3 : vector<1x1xf32> to vector<8x1xf32>
    %15 = arith.addf %13, %14 : vector<8x1xf32>
    %cst_9 = arith.constant 0.000000e+00 : f32
    %16 = vector.broadcast %cst_9 : f32 to vector<8x1xf32>
    %17 = arith.subf %16, %15 : vector<8x1xf32>
    %18 = math.exp %17 : vector<8x1xf32>
    %cst_10 = arith.constant 1.000000e+00 : f32
    %19 = vector.broadcast %cst_10 : f32 to vector<8x1xf32>
    %20 = arith.addf %19, %18 : vector<8x1xf32>
    %21 = tpu.reciprocal %20 {approx = true} : vector<8x1xf32> -> vector<8x1xf32>
    %c0_11 = arith.constant 0 : index
    %c0_12 = arith.constant 0 : index
    %22 = vector.load %arg4[%c0_11, %c0_12] : memref<8x1xf32, #tpu.memory_space<vmem>>, vector<8x1xf32>
    tpu.vector_store %arg4[%c0_11, %c0_12], %21 {strides = array<i32>} : memref<8x1xf32, #tpu.memory_space<vmem>>, vector<8x1xf32>,
    return
  }
  func.func @transform_0(%arg0: i32) -> (i32, i32) {
    %c0_i32 = arith.constant 0 : i32
    %c0_i32_0 = arith.constant 0 : i32
    return %arg0, %c0_i32 : i32, i32
  }
  func.func @transform_1(%arg0: i32) -> (i32, i32) {
    %c0_i32 = arith.constant 0 : i32
    %c0_i32_0 = arith.constant 0 : i32
    %c0_i32_1 = arith.constant 0 : i32
    return %c0_i32, %c0_i32_0 : i32, i32
  }
  func.func @transform_2(%arg0: i32) -> (i32, i32) {
    %c0_i32 = arith.constant 0 : i32
    %c0_i32_0 = arith.constant 0 : i32
    %c0_i32_1 = arith.constant 0 : i32
    return %c0_i32, %c0_i32_0 : i32, i32
  }
  func.func @transform_3(%arg0: i32) -> (i32, i32) {
    %c0_i32 = arith.constant 0 : i32
    %c0_i32_0 = arith.constant 0 : i32
    return %arg0, %c0_i32 : i32, i32
  }
}

</mosaic_0001>

<bundles_post_ra>
// kernel: tpu_custom_call.1
= control target key start
LH: loop header
LB: loop body
LE: loop exit
PB: predicated region body
PF: predicated region fallthrough
CT: control target
= control target key end

     0   :  { %8 = vsyncpa [#allocation3], 0  ;;  %s307_s0 = inlined_call_operand.hbm [shape: f32[8,32], index: 0, kind: input, shape index: {}]   ;;  %s308_s1 = inlined_call_operand.hbm [shape: f32[32,128], index: 1, kind: input, shape index: {}]   ;;  %s309_s2 = inlined_call_operand.vmem [shape: f32[3,128], index: 2, kind: input, shape index: {}]   ;;  %s310_s3 = inlined_call_operand.vmem [shape: f32[8,1], index: 3, kind: output, shape index: {}]  }
   0x1   :  { %9 = vsyncpa [#allocation5], 0  ;;  %s237_s12 = smov [#allocation2]   ;;  %s238_s14 = smov [#allocation4]  }
   0x2   :  { %s16_s13 = sshll.u32 %s237_s12, 4  ;;  %s25_s15 = sshll.u32 %s238_s14, 4  ;;  %s17_s13 = int_to_ptr.vmem [resolvable:$true] %s16_s13  ;;  %s264_s15 = int_to_ptr.vmem [resolvable:$true] %s25_s15 }
   0x3   :  { %s189_s18 = scalar_lea.hbm %s307_s0, 128 }
   0x4   :  { %p190_p0 = scmp.ne.s32.totalorder %s307_s0, %s189_s18  ;;  %p193_p1 = scmp.lt.u32.totalorder %s189_s18, %s307_s0 }
   0x6   :  { %p195_p2 = pnand %p193_p1, %p190_p0 }
   0x8   :  { %198 = shalt.err (!%p195_p2)
}
   0x9   :  { %s199_s23 = scalar_lea.vmem %s17_s13, 128  ;;  %p204_p4 = scmp.lt.s32.totalorder %s17_s13, %s17_s13 }
   0xa   :  { %p200_p3 = scmp.ne.s32.totalorder %s17_s13, %s199_s23  ;;  %p205_p5 = scmp.lt.s32.totalorder %s199_s23, %s199_s23 }
   0xc   :  { %p206_p6 = por %p205_p5, %p204_p4 }
   0xe   :  { %p207_p7 = pnand %p206_p6, %p200_p3 }
  0x10   :  { %210 = shalt.err (!%p207_p7)
}
  0x11   :  { %19 = dma.hbm_to_vmem [thread:$0]  %s307_s0, 128, %s17_s13, [#allocation3]  }
  0x12   :  { %s211_s28 = scalar_lea.hbm %s308_s1, 512 }
  0x13   :  { %p212_p8 = scmp.ne.s32.totalorder %s308_s1, %s211_s28  ;;  %p215_p9 = scmp.lt.u32.totalorder %s211_s28, %s308_s1 }
  0x15   :  { %p217_p10 = pnand %p215_p9, %p212_p8 }
  0x17   :  { %220 = shalt.err (!%p217_p10)
}
  0x18   :  { %s221_s6 = scalar_lea.vmem %s264_s15, 512  ;;  %p226_p12 = scmp.lt.s32.totalorder %s264_s15, %s264_s15 }
  0x19   :  { %p222_p11 = scmp.ne.s32.totalorder %s264_s15, %s221_s6  ;;  %p227_p13 = scmp.lt.s32.totalorder %s221_s6, %s221_s6 }
  0x1b   :  { %p228_p0 = por %p227_p13, %p226_p12 }
  0x1d   :  { %p229_p1 = pnand %p228_p0, %p222_p11 }
  0x1f   :  { %232 = shalt.err (!%p229_p1)
}
  0x20   :  { %s239_s0 = smov 128   ;;  %s240_s7 = smov 8  }
  0x21   :  { %31 = dma.hbm_to_vmem [thread:$0]  %s308_s1, 512, %s264_s15, [#allocation5], %s239_s0, %s239_s0, %s240_s7  }
  0x22   :  { %233 = dma.done.wait [#allocation3], 128  }
  0x23   :  { %234 = vsyncadd [#allocation3], 4294967168 }
  0x24   :  { %235 = dma.done.wait [#allocation5], 512  }
  0x25   :  { %236 = vsyncadd [#allocation5], 4294966784  ;;  %v241_v0 = vmov 0.0|0.0   ;;  %vm242_vm0 = vmmov 0   ;;  %v243_v1 = vmov 0.0   ;;  %v44_v2 = vld [vmem:[#allocation4] sm:$0xff] }
  0x26   :  { %172 = vmatprep.subr.bf16.mxu0 %v241_v0  ;;  %169 = vmatprep.mubr.msk.f32.mxu0 %vm242_vm0, %v243_v1  ;;  %v45_v3 = vld [vmem:[#allocation4 + $0x8] sm:$0xff]  ;;  %v46_v4 = vld [vmem:[#allocation4 + $0x10] sm:$0xff]  ;;  %v47_v6 = vld [vmem:[#allocation4 + $0x18] sm:$0xff]  ;;  %vm52_vm1 = vcmask 261120   ;;  %vm144_vm2 = vcmask 7168  }
  0x27   :  { %v173_v5 = vpack.c.bf16 %v45_v3, %v44_v2  ;;  %v176_v7 = vpack.c.bf16 %v47_v6, %v46_v4  ;;  %v40_v8 = vld [vmem:[#allocation2] sm:$0xff]  ;;  %v152_v9 = vld [vmem:[%s309_s2] ss:$0 sm:$0xff]  ;;  %v154_v13 = vld [vmem:[%s309_s2 + $0x1] ss:$0 sm:$0xff] }
  0x28   :  { %v155_v16 = vld [vmem:[%s309_s2 + $0x2] ss:$0 sm:$0xff] }
  0x29   :  { %174 = vmatpush3.bf16.msra.mxu0 %v173_v5 }
  0x2a   :  { %175 = vmatprep.subr.bf16.mxu0 %v241_v0 }
  0x2d   :  { %177 = vmatpush3.bf16.msra.mxu0 %v176_v7 }
  0x30   :  { %170 = vmatmul.mubr.msk.f32.vlgmr.msra.gmra.mrb[0].mxu0 %vm52_vm1, %v40_v8 }
 0x103   :  { %v122_v10 = vpop.f32.mrb[0].mxu0 }
 0x104   :  { %v123_v11 = vadd.f32 %v152_v9, %v122_v10  ;;  %v171_v12 = vpop.f32.mrb[1].mxu0 }
 0x106   :  { %v126_v14 = vmax.f32 %v123_v11, 0.0 }
 0x108   :  { %v131_v15 = vmul.f32 %v154_v13, %v126_v14 }
 0x10a   :  { %132 = vadd.xlane.f32.xlu0 %v131_v15 }
 0x197   :  { %v133_v17 = vpop.xlane.xlu0 %132 }
 0x198   :  { %v138_v18 = vadd.f32 %v155_v16, %v133_v17 }
 0x19a   :  { %v139_v19 = vsub.f32 0.0, %v138_v18 }
 0x19c   :  { %v140_v20 = vmul.f32 1.442695, %v139_v19 }
 0x19e   :  { %185 = vpow2.f32 %v140_v20 }
 0x1a8   :  { %v186_v21 = vpop.eup %185 }
 0x1a9   :  { %v142_v22 = vadd.f32 1.0, %v186_v21 }
 0x1ab   :  { %187 = vrcp.f32 %v142_v22 }
 0x1b5   :  { %v188_v23 = vpop.eup %187 }
 0x1b6   :  { %145 = vst.msk [vmem:[%s310_s3] sm:$0xff] %vm144_vm2, %v188_v23 }
 0x1b7   :  { %150 = vsyncpa [#allocation3], 1 }
 0x1b8   :  { %151 = vsyncpa [#allocation5], 1 }

</bundles_post_ra>
